<compile_context>
chip_gen: v5e
topology: v5e:2x2
jax: 0.10.0
libtpu: 0.0.40
codegen_flags: <defaults>
</compile_context>

<pallas_src>
import functools
import math

import jax
import jax.numpy as jnp
from jax import lax
from jax.experimental import pallas as pl
from jax.experimental.pallas import tpu as pltpu


_VMEM_LIMIT = 48 * 1024 * 1024     # explicit scoped-VMEM budget (all generations)


def _round_up(x, m):
    return ((x + m - 1) // m) * m


def _row_tile(n, granule=8, max_tile=512):
    """Row tile: multiple of the sublane granule, >=2 grid steps when possible."""
    t = _round_up(max(-(-n // 2), 1), granule)
    t = min(t, max_tile)
    if t >= n:
        return n                   # single full block (full dim is always legal)
    return t


def _layernorm(x, g, b, eps):
    mu = jnp.mean(x, axis=-1, keepdims=True)
    var = jnp.mean(jnp.square(x - mu), axis=-1, keepdims=True)
    return (x - mu) * lax.rsqrt(var + eps) * g + b


# ---------------------------------------------------------------------------
# Kernels
# ---------------------------------------------------------------------------

def _kv_proj_kernel(x_ref, w_ref, b_ref, o_ref):
    # x: (tn, C) f32   w: (2C, C) bf16   b: (1, 2C) f32   o: (tn, 2C) bf16
    y = lax.dot_general(x_ref[...].astype(jnp.bfloat16), w_ref[...],
                        (((1,), (1,)), ((), ())),
                        preferred_element_type=jnp.float32)
    o_ref[...] = (y + b_ref[...]).astype(o_ref.dtype)


def _attn_fused_kernel(q_ref, kv_ref, wq_ref, bq_ref, wo_ref, bo_ref,
                       g1_ref, be1_ref, o_ref, *, nhead, d_head, scale, eps):
    # q:  (1, tq, C)  f32   (also the residual)
    # kv: (1, S, 2C)  bf16  (K columns [0:C], V columns [C:2C])
    # weights: Wq (C,C) bf16, Wo (C,C) bf16; biases / LN params (1, C) f32
    C = nhead * d_head
    q_raw = q_ref[0]                                          # (tq, C) f32
    kv = kv_ref[0]                                            # (S, 2C) bf16

    # Q projection (bf16 operands, f32 accumulation), pre-scaled by 1/sqrt(Dh).
    qp = lax.dot_general(q_raw.astype(jnp.bfloat16), wq_ref[...],
                         (((1,), (1,)), ((), ())),
                         preferred_element_type=jnp.float32) + bq_ref[...]
    qp = (qp * scale).astype(jnp.bfloat16)                    # (tq, C)

    heads = []
    for h in range(nhead):                                    # static unroll
        lo = h * d_head
        qh = qp[:, lo:lo + d_head]                            # (tq, Dh) bf16
        kh = kv[:, lo:lo + d_head]                            # (S,  Dh) bf16
        vh = kv[:, C + lo:C + lo + d_head]                    # (S,  Dh) bf16
        s = lax.dot_general(qh, kh, (((1,), (1,)), ((), ())),
                            preferred_element_type=jnp.float32)   # (tq, S) f32
        s = s - jnp.max(s, axis=-1, keepdims=True)
        p = jnp.exp(s)
        inv = pl.reciprocal(jnp.sum(p, axis=-1, keepdims=True), approx=True)
        p = (p * inv).astype(jnp.bfloat16)
        heads.append(jnp.dot(p, vh, preferred_element_type=jnp.float32))
    attn = jnp.concatenate(heads, axis=-1)                    # (tq, C) f32

    # Out-projection + residual + LayerNorm1, written lane-dense as (tq, C).
    y = lax.dot_general(attn.astype(jnp.bfloat16), wo_ref[...],
                        (((1,), (1,)), ((), ())),
                        preferred_element_type=jnp.float32) + bo_ref[...]
    x = q_raw + y
    o_ref[0] = _layernorm(x, g1_ref[...], be1_ref[...], eps).astype(o_ref.dtype)


def _ffn_res_ln_kernel(x_ref, w1_ref, b1_ref, w2_ref, b2_ref, g_ref, be_ref,
                       o_ref, *, eps):
    # x: (tn, C) f32   w1: (F, C) bf16   w2: (C, F) bf16
    x = x_ref[...]
    h = lax.dot_general(x.astype(jnp.bfloat16), w1_ref[...],
                        (((1,), (1,)), ((), ())),
                        preferred_element_type=jnp.float32) + b1_ref[...]
    h = jnp.maximum(h, 0.0)                                   # relu
    y = lax.dot_general(h.astype(jnp.bfloat16), w2_ref[...],
                        (((1,), (1,)), ((), ())),
                        preferred_element_type=jnp.float32) + b2_ref[...]
    o_ref[...] = _layernorm(x + y, g_ref[...], be_ref[...], eps).astype(o_ref.dtype)


# ---------------------------------------------------------------------------
# pallas_call wrappers
# ---------------------------------------------------------------------------

def _kv_project(k_flat, wkv, bkv):
    n, C = k_flat.shape
    C2 = wkv.shape[0]
    tn = _row_tile(n, granule=16)          # bf16 output: 16-row sublane granule
    return pl.pallas_call(
        _kv_proj_kernel,
        out_shape=jax.ShapeDtypeStruct((n, C2), jnp.bfloat16),
        grid=(pl.cdiv(n, tn),),
        in_specs=[pl.BlockSpec((tn, C), lambda i: (i, 0)),
                  pl.BlockSpec((C2, C), lambda i: (0, 0)),
                  pl.BlockSpec((1, C2), lambda i: (0, 0))],
        out_specs=pl.BlockSpec((tn, C2), lambda i: (i, 0)),
        compiler_params=pltpu.CompilerParams(
            dimension_semantics=("parallel",),
            vmem_limit_bytes=_VMEM_LIMIT),
    )(k_flat, wkv, bkv)


def _attention_block(q_bt, kv, wq, bq, wo, bo, g1, be1, *, nhead, eps):
    B, T, C = q_bt.shape
    S = kv.shape[1]
    d_head = C // nhead
    tq = T if T <= 256 else 256            # query tiling bounds the (tq, S) scores
    return pl.pallas_call(
        functools.partial(_attn_fused_kernel, nhead=nhead, d_head=d_head,
                          scale=1.0 / math.sqrt(d_head), eps=eps),
        out_shape=jax.ShapeDtypeStruct((B, T, C), jnp.float32),
        grid=(B, pl.cdiv(T, tq)),
        in_specs=[
            pl.BlockSpec((1, tq, C), lambda b, t: (b, t, 0)),      # q tile
            pl.BlockSpec((1, S, 2 * C), lambda b, t: (b, 0, 0)),   # kv (resident over t)
            pl.BlockSpec((C, C), lambda b, t: (0, 0)),             # Wq
            pl.BlockSpec((1, C), lambda b, t: (0, 0)),             # bq
            pl.BlockSpec((C, C), lambda b, t: (0, 0)),             # Wo
            pl.BlockSpec((1, C), lambda b, t: (0, 0)),             # bo
            pl.BlockSpec((1, C), lambda b, t: (0, 0)),             # LN1 gamma
            pl.BlockSpec((1, C), lambda b, t: (0, 0)),             # LN1 beta
        ],
        out_specs=pl.BlockSpec((1, tq, C), lambda b, t: (b, t, 0)),
        compiler_params=pltpu.CompilerParams(
            dimension_semantics=("parallel", "arbitrary"),
            vmem_limit_bytes=_VMEM_LIMIT),
    )(q_bt, kv, wq, bq, wo, bo, g1, be1)


def _ffn_res_ln(x, w1, b1, w2, b2, g, be, eps):
    n, C = x.shape
    dff = w1.shape[0]
    tn = _row_tile(n, granule=8)
    return pl.pallas_call(
        functools.partial(_ffn_res_ln_kernel, eps=eps),
        out_shape=jax.ShapeDtypeStruct((n, C), x.dtype),
        grid=(pl.cdiv(n, tn),),
        in_specs=[pl.BlockSpec((tn, C), lambda i: (i, 0)),
                  pl.BlockSpec((dff, C), lambda i: (0, 0)),
                  pl.BlockSpec((1, dff), lambda i: (0, 0)),
                  pl.BlockSpec((C, dff), lambda i: (0, 0)),
                  pl.BlockSpec((1, C), lambda i: (0, 0)),
                  pl.BlockSpec((1, C), lambda i: (0, 0)),
                  pl.BlockSpec((1, C), lambda i: (0, 0))],
        out_specs=pl.BlockSpec((tn, C), lambda i: (i, 0)),
        compiler_params=pltpu.CompilerParams(
            dimension_semantics=("parallel",),
            vmem_limit_bytes=_VMEM_LIMIT),
    )(x, w1, b1, w2, b2, g, be)


# ---------------------------------------------------------------------------
# Full forward pass
# ---------------------------------------------------------------------------

def cross_transformer_encoder_layer(q, k, params, *, nhead, layer_norm_eps=1e-5):
    """Pallas forward of CrossTransformerEncoderLayer (default config).

    q: (T, B, C)   k: (S, B, C)   returns (T, B, C).
    """
    T, B, C = q.shape
    S = k.shape[0]
    assert C % nhead == 0

    # Matmul weights in bf16 (MXU native); biases / LN params stay f32.
    w_in = params["in_proj_weight"]              # (3C, C)
    b_in = params["in_proj_bias"]                # (3C,)
    wq = w_in[:C].astype(jnp.bfloat16)           # (C, C)
    wkv = w_in[C:].astype(jnp.bfloat16)          # (2C, C)   fused K/V projection
    bq = b_in[:C].reshape(1, C).astype(jnp.float32)
    bkv = b_in[C:].reshape(1, 2 * C).astype(jnp.float32)
    wo = params["out_proj_weight"].astype(jnp.bfloat16)
    bo = params["out_proj_bias"].reshape(1, C).astype(jnp.float32)
    w1 = params["linear1_weight"].astype(jnp.bfloat16)
    b1 = params["linear1_bias"].reshape(1, -1).astype(jnp.float32)
    w2 = params["linear2_weight"].astype(jnp.bfloat16)
    b2 = params["linear2_bias"].reshape(1, C).astype(jnp.float32)
    g1 = params["norm1_weight"].reshape(1, C).astype(jnp.float32)
    be1 = params["norm1_bias"].reshape(1, C).astype(jnp.float32)
    g2 = params["norm2_weight"].reshape(1, C).astype(jnp.float32)
    be2 = params["norm2_bias"].reshape(1, C).astype(jnp.float32)

    # Batch-major layout: the only wrapper transposes left (q in, k in, out back).
    q_bt = jnp.transpose(q, (1, 0, 2))                         # (B, T, C)
    k_bt = jnp.transpose(k, (1, 0, 2))                         # (B, S, C)

    # Fused K/V projection: one MXU pass of output width 2C, stored in bf16.
    kv = _kv_project(k_bt.reshape(B * S, C), wkv, bkv).reshape(B, S, 2 * C)

    # Q-proj + per-head attention + out-proj + residual + LayerNorm1 (one kernel).
    x1 = _attention_block(q_bt, kv, wq, bq, wo, bo, g1, be1,
                          nhead=nhead, eps=layer_norm_eps)     # (B, T, C) f32

    # linear1 + relu + linear2 + residual + LayerNorm2 (one kernel).
    x2 = _ffn_res_ln(x1.reshape(B * T, C), w1, b1, w2, b2, g2, be2,
                     layer_norm_eps)

    return x2.reshape(B, T, C).transpose(1, 0, 2)


# ---------------------------------------------------------------------------
# Pure-JAX reference (mirrors the PyTorch default forward path, f32)
# ---------------------------------------------------------------------------

def _reference_forward(q, k, params, *, nhead, eps=1e-5):
    T, B, C = q.shape
    S = k.shape[0]
    H, Dh = nhead, C // nhead
    qb = jnp.transpose(q, (1, 0, 2))
    kb = jnp.transpose(k, (1, 0, 2))
    w, bias = params["in_proj_weight"], params["in_proj_bias"]
    qp = qb @ w[:C].T + bias[:C]
    kp = kb @ w[C:2 * C].T + bias[C:2 * C]
    vp = kb @ w[2 * C:].T + bias[2 * C:]
    qh = qp.reshape(B, T, H, Dh).transpose(0, 2, 1, 3)
    kh = kp.reshape(B, S, H, Dh).transpose(0, 2, 1, 3)
    vh = vp.reshape(B, S, H, Dh).transpose(0, 2, 1, 3)
    s = jnp.einsum("bhtd,bhsd->bhts", qh, kh) / math.sqrt(Dh)
    p = jax.nn.softmax(s, axis=-1)
    ao = jnp.einsum("bhts,bhsd->bhtd", p, vh)
    ao = ao.transpose(0, 2, 1, 3).reshape(B, T, C)
    ao = ao @ params["out_proj_weight"].T + params["out_proj_bias"]

    def ln(x, g, b):
        mu = x.mean(-1, keepdims=True)
        var = ((x - mu) ** 2).mean(-1, keepdims=True)
        return (x - mu) / jnp.sqrt(var + eps) * g + b

    x = ln(qb + ao, params["norm1_weight"], params["norm1_bias"])
    ff = jnp.maximum(x @ params["linear1_weight"].T + params["linear1_bias"], 0.0)
    ff = ff @ params["linear2_weight"].T + params["linear2_bias"]
    x = ln(x + ff, params["norm2_weight"], params["norm2_bias"])
    return x.transpose(1, 0, 2)


if __name__ == "__main__":
    # Small config consistent with the module: d_model=32, nhead=4, dff=64,
    # query length T=8, key length S=16, batch B=2.
    d_model, nhead, dff = 32, 4, 64
    T, S, B = 8, 16, 2

    key = jax.random.PRNGKey(0)
    ks = jax.random.split(key, 10)

    def init(kk, shape, scale=0.1):
        return jax.random.normal(kk, shape, dtype=jnp.float32) * scale

    params = {
        "in_proj_weight":  init(ks[0], (3 * d_model, d_model)),
        "in_proj_bias":    init(ks[1], (3 * d_model,)),
        "out_proj_weight": init(ks[2], (d_model, d_model)),
        "out_proj_bias":   init(ks[3], (d_model,)),
        "linear1_weight":  init(ks[4], (dff, d_model)),
        "linear1_bias":    init(ks[5], (dff,)),
        "linear2_weight":  init(ks[6], (d_model, dff)),
        "linear2_bias":    init(ks[7], (d_model,)),
        "norm1_weight":    jnp.ones((d_model,), jnp.float32),
        "norm1_bias":      jnp.zeros((d_model,), jnp.float32),
        "norm2_weight":    jnp.ones((d_model,), jnp.float32),
        "norm2_bias":      jnp.zeros((d_model,), jnp.float32),
    }

    q = jax.random.normal(ks[8], (T, B, d_model), dtype=jnp.float32)
    k = jax.random.normal(ks[9], (S, B, d_model), dtype=jnp.float32)

    fwd = jax.jit(functools.partial(cross_transformer_encoder_layer, nhead=nhead))
    out = jax.block_until_ready(fwd(q, k, params))

    ref = _reference_forward(q, k, params, nhead=nhead)
    assert out.shape == (T, B, d_model)
    # bf16 matmul operands -> slightly looser tolerance than pure-f32.
    err = float(jnp.max(jnp.abs(out - ref)))
    assert jnp.allclose(out, ref, atol=2e-2, rtol=2e-2), err

    print("KERNEL_OK")
</pallas_src>

<mosaic_0001>
module attributes {stable_mosaic.version = 11 : i64} {
  func.func @_kv_proj_kernel(%arg0: i32, %arg1: memref<16x32xf32, #tpu.memory_space<vmem>>, %arg2: memref<64x32xbf16, #tpu.memory_space<vmem>>, %arg3: memref<1x64xf32, #tpu.memory_space<vmem>>, %arg4: memref<16x64xbf16, #tpu.memory_space<vmem>>) attributes {dimension_semantics = [#tpu.dimension_semantics<parallel>], iteration_bounds = array<i64: 2>, scalar_prefetch = 0 : i64, scratch_operands = 0 : i64, tpu.core_type = #tpu.core_type<tc>, window_params = [{transform_indices = @transform_0, window_bounds = array<i64: 16, 32>}, {pipeline_mode = #tpu.pipeline_mode<synchronous>, transform_indices = @transform_1, window_bounds = array<i64: 64, 32>}, {pipeline_mode = #tpu.pipeline_mode<synchronous>, transform_indices = @transform_2, window_bounds = array<i64: 1, 64>}, {transform_indices = @transform_3, window_bounds = array<i64: 16, 64>}]} {
    %c0 = arith.constant 0 : index
    %c0_0 = arith.constant 0 : index
    %0 = vector.load %arg1[%c0, %c0_0] : memref<16x32xf32, #tpu.memory_space<vmem>>, vector<16x32xf32>
    %1 = arith.truncf %0 : vector<16x32xf32> to vector<16x32xbf16>
    %c0_1 = arith.constant 0 : index
    %c0_2 = arith.constant 0 : index
    %2 = vector.load %arg2[%c0_1, %c0_2] : memref<64x32xbf16, #tpu.memory_space<vmem>>, vector<64x32xbf16>
    %cst = arith.constant dense<0.000000e+00> : vector<16x64xf32>
    %3 = tpu.matmul %1, %2, %cst {dimension_numbers = #tpu.dot_dimension_numbers<[1], [1], [0], [0], [0, 0, 1, 0], [], []>} : vector<16x32xbf16>, vector<64x32xbf16>, vector<16x64xf32> -> vector<16x64xf32>
    %c0_3 = arith.constant 0 : index
    %c0_4 = arith.constant 0 : index
    %4 = vector.load %arg3[%c0_3, %c0_4] : memref<1x64xf32, #tpu.memory_space<vmem>>, vector<1x64xf32>
    %5 = vector.broadcast %4 : vector<1x64xf32> to vector<16x64xf32>
    %6 = arith.addf %3, %5 : vector<16x64xf32>
    %7 = arith.truncf %6 : vector<16x64xf32> to vector<16x64xbf16>
    %c0_5 = arith.constant 0 : index
    %c0_6 = arith.constant 0 : index
    %8 = vector.load %arg4[%c0_5, %c0_6] : memref<16x64xbf16, #tpu.memory_space<vmem>>, vector<16x64xbf16>
    tpu.vector_store %arg4[%c0_5, %c0_6], %7 {strides = array<i32>} : memref<16x64xbf16, #tpu.memory_space<vmem>>, vector<16x64xbf16>,
    return
  }
  func.func @transform_0(%arg0: i32) -> (i32, i32) {
    %c0_i32 = arith.constant 0 : i32
    %c0_i32_0 = arith.constant 0 : i32
    return %arg0, %c0_i32 : i32, i32
  }
  func.func @transform_1(%arg0: i32) -> (i32, i32) {
    %c0_i32 = arith.constant 0 : i32
    %c0_i32_0 = arith.constant 0 : i32
    %c0_i32_1 = arith.constant 0 : i32
    return %c0_i32, %c0_i32_0 : i32, i32
  }
  func.func @transform_2(%arg0: i32) -> (i32, i32) {
    %c0_i32 = arith.constant 0 : i32
    %c0_i32_0 = arith.constant 0 : i32
    %c0_i32_1 = arith.constant 0 : i32
    return %c0_i32, %c0_i32_0 : i32, i32
  }
  func.func @transform_3(%arg0: i32) -> (i32, i32) {
    %c0_i32 = arith.constant 0 : i32
    %c0_i32_0 = arith.constant 0 : i32
    return %arg0, %c0_i32 : i32, i32
  }
}

module attributes {stable_mosaic.version = 11 : i64} {
  func.func @_ffn_res_ln_kernel(%arg0: i32, %arg1: memref<8x32xf32, #tpu.memory_space<vmem>>, %arg2: memref<64x32xbf16, #tpu.memory_space<vmem>>, %arg3: memref<1x64xf32, #tpu.memory_space<vmem>>, %arg4: memref<32x64xbf16, #tpu.memory_space<vmem>>, %arg5: memref<1x32xf32, #tpu.memory_space<vmem>>, %arg6: memref<1x32xf32, #tpu.memory_space<vmem>>, %arg7: memref<1x32xf32, #tpu.memory_space<vmem>>, %arg8: memref<8x32xf32, #tpu.memory_space<vmem>>) attributes {dimension_semantics = [#tpu.dimension_semantics<parallel>], iteration_bounds = array<i64: 2>, scalar_prefetch = 0 : i64, scratch_operands = 0 : i64, tpu.core_type = #tpu.core_type<tc>, window_params = [{transform_indices = @transform_0, window_bounds = array<i64: 8, 32>}, {pipeline_mode = #tpu.pipeline_mode<synchronous>, transform_indices = @transform_1, window_bounds = array<i64: 64, 32>}, {pipeline_mode = #tpu.pipeline_mode<synchronous>, transform_indices = @transform_2, window_bounds = array<i64: 1, 64>}, {pipeline_mode = #tpu.pipeline_mode<synchronous>, transform_indices = @transform_3, window_bounds = array<i64: 32, 64>}, {pipeline_mode = #tpu.pipeline_mode<synchronous>, transform_indices = @transform_4, window_bounds = array<i64: 1, 32>}, {pipeline_mode = #tpu.pipeline_mode<synchronous>, transform_indices = @transform_5, window_bounds = array<i64: 1, 32>}, {pipeline_mode = #tpu.pipeline_mode<synchronous>, transform_indices = @transform_6, window_bounds = array<i64: 1, 32>}, {transform_indices = @transform_7, window_bounds = array<i64: 8, 32>}]} {
    %c0 = arith.constant 0 : index
    %c0_0 = arith.constant 0 : index
    %0 = vector.load %arg1[%c0, %c0_0] : memref<8x32xf32, #tpu.memory_space<vmem>>, vector<8x32xf32>
    %1 = arith.truncf %0 : vector<8x32xf32> to vector<8x32xbf16>
    %c0_1 = arith.constant 0 : index
    %c0_2 = arith.constant 0 : index
    %2 = vector.load %arg2[%c0_1, %c0_2] : memref<64x32xbf16, #tpu.memory_space<vmem>>, vector<64x32xbf16>
    %cst = arith.constant dense<0.000000e+00> : vector<8x64xf32>
    %3 = tpu.matmul %1, %2, %cst {dimension_numbers = #tpu.dot_dimension_numbers<[1], [1], [0], [0], [0, 0, 1, 0], [], []>} : vector<8x32xbf16>, vector<64x32xbf16>, vector<8x64xf32> -> vector<8x64xf32>
    %c0_3 = arith.constant 0 : index
    %c0_4 = arith.constant 0 : index
    %4 = vector.load %arg3[%c0_3, %c0_4] : memref<1x64xf32, #tpu.memory_space<vmem>>, vector<1x64xf32>
    %5 = vector.broadcast %4 : vector<1x64xf32> to vector<8x64xf32>
    %6 = arith.addf %3, %5 : vector<8x64xf32>
    %cst_5 = arith.constant 0.000000e+00 : f32
    %7 = vector.broadcast %cst_5 : f32 to vector<8x64xf32>
    %8 = arith.maximumf %6, %7 : vector<8x64xf32>
    %9 = arith.truncf %8 : vector<8x64xf32> to vector<8x64xbf16>
    %c0_6 = arith.constant 0 : index
    %c0_7 = arith.constant 0 : index
    %10 = vector.load %arg4[%c0_6, %c0_7] : memref<32x64xbf16, #tpu.memory_space<vmem>>, vector<32x64xbf16>
    %cst_8 = arith.constant dense<0.000000e+00> : vector<8x32xf32>
    %11 = tpu.matmul %9, %10, %cst_8 {dimension_numbers = #tpu.dot_dimension_numbers<[1], [1], [0], [0], [0, 0, 1, 0], [], []>} : vector<8x64xbf16>, vector<32x64xbf16>, vector<8x32xf32> -> vector<8x32xf32>
    %c0_9 = arith.constant 0 : index
    %c0_10 = arith.constant 0 : index
    %12 = vector.load %arg5[%c0_9, %c0_10] : memref<1x32xf32, #tpu.memory_space<vmem>>, vector<1x32xf32>
    %13 = vector.broadcast %12 : vector<1x32xf32> to vector<8x32xf32>
    %14 = arith.addf %11, %13 : vector<8x32xf32>
    %15 = arith.addf %0, %14 : vector<8x32xf32>
    %c0_11 = arith.constant 0 : index
    %c0_12 = arith.constant 0 : index
    %16 = vector.load %arg6[%c0_11, %c0_12] : memref<1x32xf32, #tpu.memory_space<vmem>>, vector<1x32xf32>
    %c0_13 = arith.constant 0 : index
    %c0_14 = arith.constant 0 : index
    %17 = vector.load %arg7[%c0_13, %c0_14] : memref<1x32xf32, #tpu.memory_space<vmem>>, vector<1x32xf32>
    %cst_15 = arith.constant dense<0.000000e+00> : vector<8xf32>
    %18 = vector.multi_reduction <add>, %15, %cst_15 [1] : vector<8x32xf32> to vector<8xf32>
    %19 = vector.shape_cast %18 : vector<8xf32> to vector<8x1xf32>
    %cst_16 = arith.constant 3.200000e+01 : f32
    %20 = vector.broadcast %cst_16 : f32 to vector<8x1xf32>
    %21 = arith.divf %19, %20 : vector<8x1xf32>
    %22 = vector.broadcast %21 : vector<8x1xf32> to vector<8x32xf32>
    %23 = arith.subf %15, %22 : vector<8x32xf32>
    %24 = arith.mulf %23, %23 : vector<8x32xf32>
    %cst_17 = arith.constant dense<0.000000e+00> : vector<8xf32>
    %25 = vector.multi_reduction <add>, %24, %cst_17 [1] : vector<8x32xf32> to vector<8xf32>
    %26 = vector.shape_cast %25 : vector<8xf32> to vector<8x1xf32>
    %cst_18 = arith.constant 3.200000e+01 : f32
    %27 = vector.broadcast %cst_18 : f32 to vector<8x1xf32>
    %28 = arith.divf %26, %27 : vector<8x1xf32>
    %29 = vector.broadcast %21 : vector<8x1xf32> to vector<8x32xf32>
    %30 = arith.subf %15, %29 : vector<8x32xf32>
    %cst_19 = arith.constant 9.99999974E-6 : f32
    %31 = vector.broadcast %cst_19 : f32 to vector<8x1xf32>
    %32 = arith.addf %28, %31 : vector<8x1xf32>
    %33 = math.rsqrt %32 : vector<8x1xf32>
    %34 = vector.broadcast %33 : vector<8x1xf32> to vector<8x32xf32>
    %35 = arith.mulf %30, %34 : vector<8x32xf32>
    %36 = vector.broadcast %16 : vector<1x32xf32> to vector<8x32xf32>
    %37 = arith.mulf %35, %36 : vector<8x32xf32>
    %38 = vector.broadcast %17 : vector<1x32xf32> to vector<8x32xf32>
    %39 = arith.addf %37, %38 : vector<8x32xf32>
    %c0_20 = arith.constant 0 : index
    %c0_21 = arith.constant 0 : index
    %40 = vector.load %arg8[%c0_20, %c0_21] : memref<8x32xf32, #tpu.memory_space<vmem>>, vector<8x32xf32>
    tpu.vector_store %arg8[%c0_20, %c0_21], %39 {strides = array<i32>} : memref<8x32xf32, #tpu.memory_space<vmem>>, vector<8x32xf32>,
    return
  }
  func.func @transform_0(%arg0: i32) -> (i32, i32) {
    %c0_i32 = arith.constant 0 : i32
    %c0_i32_0 = arith.constant 0 : i32
    return %arg0, %c0_i32 : i32, i32
  }
  func.func @transform_1(%arg0: i32) -> (i32, i32) {
    %c0_i32 = arith.constant 0 : i32
    %c0_i32_0 = arith.constant 0 : i32
    %c0_i32_1 = arith.constant 0 : i32
    return %c0_i32, %c0_i32_0 : i32, i32
  }
  func.func @transform_2(%arg0: i32) -> (i32, i32) {
    %c0_i32 = arith.constant 0 : i32
    %c0_i32_0 = arith.constant 0 : i32
    %c0_i32_1 = arith.constant 0 : i32
    return %c0_i32, %c0_i32_0 : i32, i32
  }
  func.func @transform_3(%arg0: i32) -> (i32, i32) {
    %c0_i32 = arith.constant 0 : i32
    %c0_i32_0 = arith.constant 0 : i32
    %c0_i32_1 = arith.constant 0 : i32
    return %c0_i32, %c0_i32_0 : i32, i32
  }
  func.func @transform_4(%arg0: i32) -> (i32, i32) {
    %c0_i32 = arith.constant 0 : i32
    %c0_i32_0 = arith.constant 0 : i32
    %c0_i32_1 = arith.constant 0 : i32
    return %c0_i32, %c0_i32_0 : i32, i32
  }
  func.func @transform_5(%arg0: i32) -> (i32, i32) {
    %c0_i32 = arith.constant 0 : i32
    %c0_i32_0 = arith.constant 0 : i32
    %c0_i32_1 = arith.constant 0 : i32
    return %c0_i32, %c0_i32_0 : i32, i32
  }
  func.func @transform_6(%arg0: i32) -> (i32, i32) {
    %c0_i32 = arith.constant 0 : i32
    %c0_i32_0 = arith.constant 0 : i32
    %c0_i32_1 = arith.constant 0 : i32
    return %c0_i32, %c0_i32_0 : i32, i32
  }
  func.func @transform_7(%arg0: i32) -> (i32, i32) {
    %c0_i32 = arith.constant 0 : i32
    %c0_i32_0 = arith.constant 0 : i32
    return %arg0, %c0_i32 : i32, i32
  }
}

module attributes {stable_mosaic.version = 11 : i64} {
  func.func @_attn_fused_kernel(%arg0: i32, %arg1: i32, %arg2: memref<1x8x32xf32, #tpu.memory_space<vmem>>, %arg3: memref<1x16x64xbf16, #tpu.memory_space<vmem>>, %arg4: memref<32x32xbf16, #tpu.memory_space<vmem>>, %arg5: memref<1x32xf32, #tpu.memory_space<vmem>>, %arg6: memref<32x32xbf16, #tpu.memory_space<vmem>>, %arg7: memref<1x32xf32, #tpu.memory_space<vmem>>, %arg8: memref<1x32xf32, #tpu.memory_space<vmem>>, %arg9: memref<1x32xf32, #tpu.memory_space<vmem>>, %arg10: memref<1x8x32xf32, #tpu.memory_space<vmem>>) attributes {dimension_semantics = [#tpu.dimension_semantics<parallel>, #tpu.dimension_semantics<arbitrary>], iteration_bounds = array<i64: 2, 1>, scalar_prefetch = 0 : i64, scratch_operands = 0 : i64, tpu.core_type = #tpu.core_type<tc>, window_params = [{transform_indices = @transform_0, window_bounds = array<i64: 1, 8, 32>}, {transform_indices = @transform_1, window_bounds = array<i64: 1, 16, 64>}, {pipeline_mode = #tpu.pipeline_mode<synchronous>, transform_indices = @transform_2, window_bounds = array<i64: 32, 32>}, {pipeline_mode = #tpu.pipeline_mode<synchronous>, transform_indices = @transform_3, window_bounds = array<i64: 1, 32>}, {pipeline_mode = #tpu.pipeline_mode<synchronous>, transform_indices = @transform_4, window_bounds = array<i64: 32, 32>}, {pipeline_mode = #tpu.pipeline_mode<synchronous>, transform_indices = @transform_5, window_bounds = array<i64: 1, 32>}, {pipeline_mode = #tpu.pipeline_mode<synchronous>, transform_indices = @transform_6, window_bounds = array<i64: 1, 32>}, {pipeline_mode = #tpu.pipeline_mode<synchronous>, transform_indices = @transform_7, window_bounds = array<i64: 1, 32>}, {transform_indices = @transform_8, window_bounds = array<i64: 1, 8, 32>}]} {
    %c0 = arith.constant 0 : index
    %c0_0 = arith.constant 0 : index
    %c0_1 = arith.constant 0 : index
    %0 = vector.load %arg2[%c0, %c0_0, %c0_1] : memref<1x8x32xf32, #tpu.memory_space<vmem>>, vector<1x8x32xf32>
    %1 = vector.shape_cast %0 : vector<1x8x32xf32> to vector<8x32xf32>
    %c0_2 = arith.constant 0 : index
    %c0_3 = arith.constant 0 : index
    %c0_4 = arith.constant 0 : index
    %2 = vector.load %arg3[%c0_2, %c0_3, %c0_4] : memref<1x16x64xbf16, #tpu.memory_space<vmem>>, vector<1x16x64xbf16>
    %3 = vector.shape_cast %2 : vector<1x16x64xbf16> to vector<16x64xbf16>
    %4 = arith.truncf %1 : vector<8x32xf32> to vector<8x32xbf16>
    %c0_5 = arith.constant 0 : index
    %c0_6 = arith.constant 0 : index
    %5 = vector.load %arg4[%c0_5, %c0_6] : memref<32x32xbf16, #tpu.memory_space<vmem>>, vector<32x32xbf16>
    %cst = arith.constant dense<0.000000e+00> : vector<8x32xf32>
    %6 = tpu.matmul %4, %5, %cst {dimension_numbers = #tpu.dot_dimension_numbers<[1], [1], [0], [0], [0, 0, 1, 0], [], []>} : vector<8x32xbf16>, vector<32x32xbf16>, vector<8x32xf32> -> vector<8x32xf32>
    %c0_7 = arith.constant 0 : index
    %c0_8 = arith.constant 0 : index
    %7 = vector.load %arg5[%c0_7, %c0_8] : memref<1x32xf32, #tpu.memory_space<vmem>>, vector<1x32xf32>
    %8 = vector.broadcast %7 : vector<1x32xf32> to vector<8x32xf32>
    %9 = arith.addf %6, %8 : vector<8x32xf32>
    %cst_9 = arith.constant 0.353553385 : f32
    %10 = vector.broadcast %cst_9 : f32 to vector<8x32xf32>
    %11 = arith.mulf %9, %10 : vector<8x32xf32>
    %12 = arith.truncf %11 : vector<8x32xf32> to vector<8x32xbf16>
    %13 = vector.extract_strided_slice %12 {offsets = [0, 0], sizes = [8, 8], strides = [1, 1]} : vector<8x32xbf16> to vector<8x8xbf16>
    %14 = vector.extract_strided_slice %3 {offsets = [0, 0], sizes = [16, 8], strides = [1, 1]} : vector<16x64xbf16> to vector<16x8xbf16>
    %15 = vector.extract_strided_slice %3 {offsets = [0, 32], sizes = [16, 8], strides = [1, 1]} : vector<16x64xbf16> to vector<16x8xbf16>
    %cst_10 = arith.constant dense<0.000000e+00> : vector<8x16xf32>
    %16 = tpu.matmul %13, %14, %cst_10 {dimension_numbers = #tpu.dot_dimension_numbers<[1], [1], [0], [0], [0, 0, 1, 0], [], []>} : vector<8x8xbf16>, vector<16x8xbf16>, vector<8x16xf32> -> vector<8x16xf32>
    %cst_11 = arith.constant dense<0xFF800000> : vector<8xf32>
    %17 = vector.multi_reduction <maximumf>, %16, %cst_11 [1] : vector<8x16xf32> to vector<8xf32>
    %18 = vector.shape_cast %17 : vector<8xf32> to vector<8x1xf32>
    %19 = vector.broadcast %18 : vector<8x1xf32> to vector<8x16xf32>
    %20 = arith.subf %16, %19 : vector<8x16xf32>
    %21 = math.exp %20 : vector<8x16xf32>
    %cst_12 = arith.constant dense<0.000000e+00> : vector<8xf32>
    %22 = vector.multi_reduction <add>, %21, %cst_12 [1] : vector<8x16xf32> to vector<8xf32>
    %23 = vector.shape_cast %22 : vector<8xf32> to vector<8x1xf32>
    %24 = tpu.reciprocal %23 {approx = true} : vector<8x1xf32> -> vector<8x1xf32>
    %25 = vector.broadcast %24 : vector<8x1xf32> to vector<8x16xf32>
    %26 = arith.mulf %21, %25 : vector<8x16xf32>
    %27 = arith.truncf %26 : vector<8x16xf32> to vector<8x16xbf16>
    %cst_13 = arith.constant dense<0.000000e+00> : vector<8x8xf32>
    %28 = tpu.matmul %27, %15, %cst_13 {dimension_numbers = #tpu.dot_dimension_numbers<[1], [0], [0], [1], [0, 0, 1, 1], [], []>} : vector<8x16xbf16>, vector<16x8xbf16>, vector<8x8xf32> -> vector<8x8xf32>
    %29 = vector.extract_strided_slice %12 {offsets = [0, 8], sizes = [8, 8], strides = [1, 1]} : vector<8x32xbf16> to vector<8x8xbf16>
    %30 = vector.extract_strided_slice %3 {offsets = [0, 8], sizes = [16, 8], strides = [1, 1]} : vector<16x64xbf16> to vector<16x8xbf16>
    %31 = vector.extract_strided_slice %3 {offsets = [0, 40], sizes = [16, 8], strides = [1, 1]} : vector<16x64xbf16> to vector<16x8xbf16>
    %cst_14 = arith.constant dense<0.000000e+00> : vector<8x16xf32>
    %32 = tpu.matmul %29, %30, %cst_14 {dimension_numbers = #tpu.dot_dimension_numbers<[1], [1], [0], [0], [0, 0, 1, 0], [], []>} : vector<8x8xbf16>, vector<16x8xbf16>, vector<8x16xf32> -> vector<8x16xf32>
    %cst_15 = arith.constant dense<0xFF800000> : vector<8xf32>
    %33 = vector.multi_reduction <maximumf>, %32, %cst_15 [1] : vector<8x16xf32> to vector<8xf32>
    %34 = vector.shape_cast %33 : vector<8xf32> to vector<8x1xf32>
    %35 = vector.broadcast %34 : vector<8x1xf32> to vector<8x16xf32>
    %36 = arith.subf %32, %35 : vector<8x16xf32>
    %37 = math.exp %36 : vector<8x16xf32>
    %cst_16 = arith.constant dense<0.000000e+00> : vector<8xf32>
    %38 = vector.multi_reduction <add>, %37, %cst_16 [1] : vector<8x16xf32> to vector<8xf32>
    %39 = vector.shape_cast %38 : vector<8xf32> to vector<8x1xf32>
    %40 = tpu.reciprocal %39 {approx = true} : vector<8x1xf32> -> vector<8x1xf32>
    %41 = vector.broadcast %40 : vector<8x1xf32> to vector<8x16xf32>
    %42 = arith.mulf %37, %41 : vector<8x16xf32>
    %43 = arith.truncf %42 : vector<8x16xf32> to vector<8x16xbf16>
    %cst_17 = arith.constant dense<0.000000e+00> : vector<8x8xf32>
    %44 = tpu.matmul %43, %31, %cst_17 {dimension_numbers = #tpu.dot_dimension_numbers<[1], [0], [0], [1], [0, 0, 1, 1], [], []>} : vector<8x16xbf16>, vector<16x8xbf16>, vector<8x8xf32> -> vector<8x8xf32>
    %45 = vector.extract_strided_slice %12 {offsets = [0, 16], sizes = [8, 8], strides = [1, 1]} : vector<8x32xbf16> to vector<8x8xbf16>
    %46 = vector.extract_strided_slice %3 {offsets = [0, 16], sizes = [16, 8], strides = [1, 1]} : vector<16x64xbf16> to vector<16x8xbf16>
    %47 = vector.extract_strided_slice %3 {offsets = [0, 48], sizes = [16, 8], strides = [1, 1]} : vector<16x64xbf16> to vector<16x8xbf16>
    %cst_18 = arith.constant dense<0.000000e+00> : vector<8x16xf32>
    %48 = tpu.matmul %45, %46, %cst_18 {dimension_numbers = #tpu.dot_dimension_numbers<[1], [1], [0], [0], [0, 0, 1, 0], [], []>} : vector<8x8xbf16>, vector<16x8xbf16>, vector<8x16xf32> -> vector<8x16xf32>
    %cst_19 = arith.constant dense<0xFF800000> : vector<8xf32>
    %49 = vector.multi_reduction <maximumf>, %48, %cst_19 [1] : vector<8x16xf32> to vector<8xf32>
    %50 = vector.shape_cast %49 : vector<8xf32> to vector<8x1xf32>
    %51 = vector.broadcast %50 : vector<8x1xf32> to vector<8x16xf32>
    %52 = arith.subf %48, %51 : vector<8x16xf32>
    %53 = math.exp %52 : vector<8x16xf32>
    %cst_20 = arith.constant dense<0.000000e+00> : vector<8xf32>
    %54 = vector.multi_reduction <add>, %53, %cst_20 [1] : vector<8x16xf32> to vector<8xf32>
    %55 = vector.shape_cast %54 : vector<8xf32> to vector<8x1xf32>
    %56 = tpu.reciprocal %55 {approx = true} : vector<8x1xf32> -> vector<8x1xf32>
    %57 = vector.broadcast %56 : vector<8x1xf32> to vector<8x16xf32>
    %58 = arith.mulf %53, %57 : vector<8x16xf32>
    %59 = arith.truncf %58 : vector<8x16xf32> to vector<8x16xbf16>
    %cst_21 = arith.constant dense<0.000000e+00> : vector<8x8xf32>
    %60 = tpu.matmul %59, %47, %cst_21 {dimension_numbers = #tpu.dot_dimension_numbers<[1], [0], [0], [1], [0, 0, 1, 1], [], []>} : vector<8x16xbf16>, vector<16x8xbf16>, vector<8x8xf32> -> vector<8x8xf32>
    %61 = vector.extract_strided_slice %12 {offsets = [0, 24], sizes = [8, 8], strides = [1, 1]} : vector<8x32xbf16> to vector<8x8xbf16>
    %62 = vector.extract_strided_slice %3 {offsets = [0, 24], sizes = [16, 8], strides = [1, 1]} : vector<16x64xbf16> to vector<16x8xbf16>
    %63 = vector.extract_strided_slice %3 {offsets = [0, 56], sizes = [16, 8], strides = [1, 1]} : vector<16x64xbf16> to vector<16x8xbf16>
    %cst_22 = arith.constant dense<0.000000e+00> : vector<8x16xf32>
    %64 = tpu.matmul %61, %62, %cst_22 {dimension_numbers = #tpu.dot_dimension_numbers<[1], [1], [0], [0], [0, 0, 1, 0], [], []>} : vector<8x8xbf16>, vector<16x8xbf16>, vector<8x16xf32> -> vector<8x16xf32>
    %cst_23 = arith.constant dense<0xFF800000> : vector<8xf32>
    %65 = vector.multi_reduction <maximumf>, %64, %cst_23 [1] : vector<8x16xf32> to vector<8xf32>
    %66 = vector.shape_cast %65 : vector<8xf32> to vector<8x1xf32>
    %67 = vector.broadcast %66 : vector<8x1xf32> to vector<8x16xf32>
    %68 = arith.subf %64, %67 : vector<8x16xf32>
    %69 = math.exp %68 : vector<8x16xf32>
    %cst_24 = arith.constant dense<0.000000e+00> : vector<8xf32>
    %70 = vector.multi_reduction <add>, %69, %cst_24 [1] : vector<8x16xf32> to vector<8xf32>
    %71 = vector.shape_cast %70 : vector<8xf32> to vector<8x1xf32>
    %72 = tpu.reciprocal %71 {approx = true} : vector<8x1xf32> -> vector<8x1xf32>
    %73 = vector.broadcast %72 : vector<8x1xf32> to vector<8x16xf32>
    %74 = arith.mulf %69, %73 : vector<8x16xf32>
    %75 = arith.truncf %74 : vector<8x16xf32> to vector<8x16xbf16>
    %cst_25 = arith.constant dense<0.000000e+00> : vector<8x8xf32>
    %76 = tpu.matmul %75, %63, %cst_25 {dimension_numbers = #tpu.dot_dimension_numbers<[1], [0], [0], [1], [0, 0, 1, 1], [], []>} : vector<8x16xbf16>, vector<16x8xbf16>, vector<8x8xf32> -> vector<8x8xf32>
    %77 = tpu.concatenate %28, %44, %60, %76 in 1 : vector<8x8xf32>, vector<8x8xf32>, vector<8x8xf32>, vector<8x8xf32> -> vector<8x32xf32>
    %78 = arith.truncf %77 : vector<8x32xf32> to vector<8x32xbf16>
    %c0_26 = arith.constant 0 : index
    %c0_27 = arith.constant 0 : index
    %79 = vector.load %arg6[%c0_26, %c0_27] : memref<32x32xbf16, #tpu.memory_space<vmem>>, vector<32x32xbf16>
    %cst_28 = arith.constant dense<0.000000e+00> : vector<8x32xf32>
    %80 = tpu.matmul %78, %79, %cst_28 {dimension_numbers = #tpu.dot_dimension_numbers<[1], [1], [0], [0], [0, 0, 1, 0], [], []>} : vector<8x32xbf16>, vector<32x32xbf16>, vector<8x32xf32> -> vector<8x32xf32>
    %c0_29 = arith.constant 0 : index
    %c0_30 = arith.constant 0 : index
    %81 = vector.load %arg7[%c0_29, %c0_30] : memref<1x32xf32, #tpu.memory_space<vmem>>, vector<1x32xf32>
    %82 = vector.broadcast %81 : vector<1x32xf32> to vector<8x32xf32>
    %83 = arith.addf %80, %82 : vector<8x32xf32>
    %84 = arith.addf %1, %83 : vector<8x32xf32>
    %c0_31 = arith.constant 0 : index
    %c0_32 = arith.constant 0 : index
    %85 = vector.load %arg8[%c0_31, %c0_32] : memref<1x32xf32, #tpu.memory_space<vmem>>, vector<1x32xf32>
    %c0_33 = arith.constant 0 : index
    %c0_34 = arith.constant 0 : index
    %86 = vector.load %arg9[%c0_33, %c0_34] : memref<1x32xf32, #tpu.memory_space<vmem>>, vector<1x32xf32>
    %cst_35 = arith.constant dense<0.000000e+00> : vector<8xf32>
    %87 = vector.multi_reduction <add>, %84, %cst_35 [1] : vector<8x32xf32> to vector<8xf32>
    %88 = vector.shape_cast %87 : vector<8xf32> to vector<8x1xf32>
    %cst_36 = arith.constant 3.200000e+01 : f32
    %89 = vector.broadcast %cst_36 : f32 to vector<8x1xf32>
    %90 = arith.divf %88, %89 : vector<8x1xf32>
    %91 = vector.broadcast %90 : vector<8x1xf32> to vector<8x32xf32>
    %92 = arith.subf %84, %91 : vector<8x32xf32>
    %93 = arith.mulf %92, %92 : vector<8x32xf32>
    %cst_37 = arith.constant dense<0.000000e+00> : vector<8xf32>
    %94 = vector.multi_reduction <add>, %93, %cst_37 [1] : vector<8x32xf32> to vector<8xf32>
    %95 = vector.shape_cast %94 : vector<8xf32> to vector<8x1xf32>
    %cst_38 = arith.constant 3.200000e+01 : f32
    %96 = vector.broadcast %cst_38 : f32 to vector<8x1xf32>
    %97 = arith.divf %95, %96 : vector<8x1xf32>
    %98 = vector.broadcast %90 : vector<8x1xf32> to vector<8x32xf32>
    %99 = arith.subf %84, %98 : vector<8x32xf32>
    %cst_39 = arith.constant 9.99999974E-6 : f32
    %100 = vector.broadcast %cst_39 : f32 to vector<8x1xf32>
    %101 = arith.addf %97, %100 : vector<8x1xf32>
    %102 = math.rsqrt %101 : vector<8x1xf32>
    %103 = vector.broadcast %102 : vector<8x1xf32> to vector<8x32xf32>
    %104 = arith.mulf %99, %103 : vector<8x32xf32>
    %105 = vector.broadcast %85 : vector<1x32xf32> to vector<8x32xf32>
    %106 = arith.mulf %104, %105 : vector<8x32xf32>
    %107 = vector.broadcast %86 : vector<1x32xf32> to vector<8x32xf32>
    %108 = arith.addf %106, %107 : vector<8x32xf32>
    %c0_40 = arith.constant 0 : index
    %c0_41 = arith.constant 0 : index
    %c0_42 = arith.constant 0 : index
    %109 = vector.load %arg10[%c0_40, %c0_41, %c0_42] : memref<1x8x32xf32, #tpu.memory_space<vmem>>, vector<1x8x32xf32>
    %110 = vector.shape_cast %109 : vector<1x8x32xf32> to vector<8x32xf32>
    %111 = vector.shape_cast %108 : vector<8x32xf32> to vector<1x8x32xf32>
    tpu.vector_store %arg10[%c0_40, %c0_41, %c0_42], %111 {strides = array<i32>} : memref<1x8x32xf32, #tpu.memory_space<vmem>>, vector<1x8x32xf32>,
    return
  }
  func.func @transform_0(%arg0: i32, %arg1: i32) -> (i32, i32, i32) {
    %c0_i32 = arith.constant 0 : i32
    %c0_i32_0 = arith.constant 0 : i32
    return %arg0, %arg1, %c0_i32 : i32, i32, i32
  }
  func.func @transform_1(%arg0: i32, %arg1: i32) -> (i32, i32, i32) {
    %c0_i32 = arith.constant 0 : i32
    %c0_i32_0 = arith.constant 0 : i32
    %c0_i32_1 = arith.constant 0 : i32
    return %arg0, %c0_i32, %c0_i32_0 : i32, i32, i32
  }
  func.func @transform_2(%arg0: i32, %arg1: i32) -> (i32, i32) {
    %c0_i32 = arith.constant 0 : i32
    %c0_i32_0 = arith.constant 0 : i32
    %c0_i32_1 = arith.constant 0 : i32
    return %c0_i32, %c0_i32_0 : i32, i32
  }
  func.func @transform_3(%arg0: i32, %arg1: i32) -> (i32, i32) {
    %c0_i32 = arith.constant 0 : i32
    %c0_i32_0 = arith.constant 0 : i32
    %c0_i32_1 = arith.constant 0 : i32
    return %c0_i32, %c0_i32_0 : i32, i32
  }
  func.func @transform_4(%arg0: i32, %arg1: i32) -> (i32, i32) {
    %c0_i32 = arith.constant 0 : i32
    %c0_i32_0 = arith.constant 0 : i32
    %c0_i32_1 = arith.constant 0 : i32
    return %c0_i32, %c0_i32_0 : i32, i32
  }
  func.func @transform_5(%arg0: i32, %arg1: i32) -> (i32, i32) {
    %c0_i32 = arith.constant 0 : i32
    %c0_i32_0 = arith.constant 0 : i32
    %c0_i32_1 = arith.constant 0 : i32
    return %c0_i32, %c0_i32_0 : i32, i32
  }
  func.func @transform_6(%arg0: i32, %arg1: i32) -> (i32, i32) {
    %c0_i32 = arith.constant 0 : i32
    %c0_i32_0 = arith.constant 0 : i32
    %c0_i32_1 = arith.constant 0 : i32
    return %c0_i32, %c0_i32_0 : i32, i32
  }
  func.func @transform_7(%arg0: i32, %arg1: i32) -> (i32, i32) {
    %c0_i32 = arith.constant 0 : i32
    %c0_i32_0 = arith.constant 0 : i32
    %c0_i32_1 = arith.constant 0 : i32
    return %c0_i32, %c0_i32_0 : i32, i32
  }
  func.func @transform_8(%arg0: i32, %arg1: i32) -> (i32, i32, i32) {
    %c0_i32 = arith.constant 0 : i32
    %c0_i32_0 = arith.constant 0 : i32
    return %arg0, %arg1, %c0_i32 : i32, i32, i32
  }
}

</mosaic_0001>

<bundles_post_ra>
// kernel: cross_transformer_encoder_layer.5
= control target key start
LH: loop header
LB: loop body
LE: loop exit
PB: predicated region body
PF: predicated region fallthrough
CT: control target
= control target key end

     0   :  { %s582_s24 = smov 0   ;;  %s647_s0 = inlined_call_operand.vmem [shape: f32[16,32], index: 0, kind: input, shape index: {}]   ;;  %s648_s1 = inlined_call_operand.vmem [shape: bf16[64,32], index: 1, kind: input, shape index: {}]   ;;  %s649_s2 = inlined_call_operand.vmem [shape: f32[1,64], index: 2, kind: input, shape index: {}]   ;;  %s650_s3 = inlined_call_operand.vmem [shape: bf16[32,64], index: 3, kind: input, shape index: {}]   ;;  %s651_s4 = inlined_call_operand.vmem [shape: f32[1,32], index: 4, kind: input, shape index: {}]   ;;  %s652_s5 = inlined_call_operand.vmem [shape: f32[1,32], index: 5, kind: input, shape index: {}]   ;;  %s653_s6 = inlined_call_operand.vmem [shape: f32[1,32], index: 6, kind: input, shape index: {}]   ;;  %s654_s7 = inlined_call_operand.vmem [shape: f32[16,32], index: 7, kind: output, shape index: {}]  }
   0x1 LB: > { %s475_s25 = sadd.s32 4294967295, %s539_s24   ;;  %p479_p0 = scmp.ge.s32.totalorder %s539_s24, 1  ;;  %s539_s24 = sphi %s582_s24, %s17_s24  }
   0x2   : > { %p236_p1 = scmp.lt.s32.totalorder %s539_s24, 3 }
   0x4   : > { %p237_p2 = pnand %p479_p0, %p236_p1 }
   0x5   : > { %p266_p3 = scmp.lt.s32.totalorder (!%p237_p2), %s475_s25, 1 }
   0x6   : > { %240 = sbr.rel (%p237_p2) target bundleno = 575 (0x23f), region = 48 }
   0xb   : > { %v513_v0 = vld [vmem:[%s648_s1 + $0x18] sm:$0xff]  ;;  %vm309_vm0 = vcmask 261120   ;;  %v515_v2 = vld [vmem:[%s650_s3 + $0x8] sm:$0xff]  ;;  %vm358_vm1 = vcmask 523264   ;;  %v512_v3 = vld [vmem:[%s648_s1 + $0x10] sm:$0xff]  ;;  %s656_s25 = smov (!%p266_p3, %s475_s25), 1 }
   0xc   : > { %v323_v1 = vsel %vm309_vm0, %v513_v0, 0  ;;  %v366_v4 = vsel %vm358_vm1, %v515_v2, 0  ;;  %v320_v5 = vsel %vm309_vm0, %v512_v3, 0  ;;  %v511_v6 = vld [vmem:[%s648_s1 + $0x8] sm:$0xff]  ;;  %v510_v8 = vld [vmem:[%s648_s1] sm:$0xff]  ;;  %s480_s13 = sshll.u32 %s656_s25, 3 }
   0xd   : > { %329 = vmatpush.bf16.xpose.msra.mxu0 %v323_v1  ;;  %374 = vmatpush.bf16.xpose.msra.mxu1 %v366_v4  ;;  %v317_v7 = vsel %vm309_vm0, %v511_v6, 0  ;;  %v314_v9 = vsel %vm309_vm0, %v510_v8, 0  ;;  %s269_s16 = scalar_lea.vmem %s647_s0, %s480_s13  ;;  %v514_v12 = vld [vmem:[%s650_s3] sm:$0xff]  ;;  %v541_v26 = vmov 32.0   ;;  %s273_s8 = scalar_lea.vmem %s654_s7, %s480_s13 }
   0xe   : > { %v275_v10 = vld [vmem:[%s269_s16] sm:$0xff]  ;;  %v363_v13 = vsel %vm358_vm1, %v514_v12, 0  ;;  %529 = vrcp.f32 %v541_v26 }
   0xf   : > { %v276_v11 = vpack.c.bf16 %v275_v10, %v275_v10  ;;  %v525_v14 = vld [vmem:[%s649_s2] ss:$0 sm:$0xff] }
  0x10   : > { %v526_v20 = vld [vmem:[%s651_s4] ss:$0 sm:$0xff] }
  0x11   : > { %v527_v47 = vld [vmem:[%s652_s5] ss:$0 sm:$0xff] }
  0x12   : > { %v528_v49 = vld [vmem:[%s653_s6] ss:$0 sm:$0xff] }
  0x14   : > { %v530_v27 = vpop.eup %529 }
  0x15   : > { %330 = vmatpush.bf16.xpose.msra.mxu0 %v320_v5  ;;  %375 = vmatpush.bf16.xpose.msra.mxu1 %v363_v13  ;;  %v388_v28 = vmul.f32 32.0, %v530_v27  ;;  %vm392_vm2 = vweird.f32 %v530_v27 }
  0x17   : > { %v389_v29 = vsub.f32 1.0, %v388_v28 }
  0x19   : > { %v390_v30 = vmul.f32 %v530_v27, %v389_v29 }
  0x1b   : > { %v391_v31 = vadd.f32 %v530_v27, %v390_v30 }
  0x1d   : > { %331 = vmatpush.bf16.xpose.msra.mxu0 %v317_v7  ;;  %v393_v32 = vsel %vm392_vm2, %v530_v27, %v391_v31 }
  0x25   : > { %332 = vmatpush.bf16.xpose.msra.mxu0 %v314_v9 }
  0x2c   : > { %498 = vmatmul.msk.bf16.vlgmr.msra.gmra.mxu0 %vm309_vm0, %v276_v11 }
  0xa9   : > { %v334_v15 = vpop.f32.mrf.mxu0 }
  0xaa   : > { %v335_v16 = vadd.f32 %v525_v14, %v334_v15 }
  0xac   : > { %v338_v17 = vmax.f32 %v335_v16, 0.0 }
  0xae   : > { %v339_v18 = vpack.c.bf16 %v338_v17, %v338_v17 }
  0xb0   : > { %507 = vmatmul.msk.bf16.vlgmr.msra.gmra.mxu1 %vm358_vm1, %v339_v18 }
  0xb1   : > { %v336_v19 = vpop.f32.mrf.mxu0 }
 0x12d   : > { %v377_v21 = vpop.f32.mrf.mxu1 }
 0x12e   : > { %v378_v22 = vadd.f32 %v526_v20, %v377_v21 }
 0x130   : > { %v381_v23 = vadd.f32 %v378_v22, %v275_v10 }
 0x132   : > { %v384_v24 = vsel %vm309_vm0, %v381_v23, 0.0 }
 0x133   : > { %385 = vadd.xlane.f32.xlu0 %v384_v24 }
 0x135   : > { %v379_v25 = vpop.f32.mrf.mxu1 }
 0x1a6   : > { %v386_v33 = vpop.xlane.xlu0 %385 }
 0x1a7   : > { %v394_v34 = vmul.f32 %v393_v32, %v386_v33 }
 0x1a9   : > { %v395_v35 = vsub.f32 %v381_v23, %v394_v34 }
 0x1ab   : > { %v396_v36 = vmul.f32 %v395_v35, %v395_v35 }
 0x1ad   : > { %v397_v37 = vsel %vm309_vm0, %v396_v36, 0.0 }
 0x1ae   : > { %398 = vadd.xlane.f32.xlu0 %v397_v37 }
 0x221   : > { %v399_v38 = vpop.xlane.xlu0 %398 }
 0x222   : > { %v400_v39 = vmul.f32 %v399_v38, %v393_v32 }
 0x224   : > { %v401_v40 = vadd.f32 1e-05, %v400_v39 }
 0x226   : > { %531 = vrsqrt.f32 %v401_v40  ;;  %vm408_vm4 = vweird.f32 %v401_v40 }
 0x22c   : > { %v532_v41 = vpop.eup %531 }
 0x22d   : > { %v403_v42 = vmul.f32 %v532_v41, %v401_v40  ;;  %vm409_vm3 = vweird.f32 %v532_v41 }
 0x22e   : > { %vm410_vm5 = vmor %vm408_vm4, %vm409_vm3 }
 0x22f   : > { %v404_v43 = vmul.f32 %v532_v41, %v403_v42 }
 0x231   : > { %v405_v44 = vmul.f32 0.5, %v404_v43 }
 0x233   : > { %v406_v45 = vsub.f32 1.5, %v405_v44 }
 0x235   : > { %v407_v46 = vmul.f32 %v532_v41, %v406_v45 }
 0x237   : > { %v411_v48 = vsel %vm410_vm5, %v532_v41, %v407_v46 }
 0x238   : > { %v412_v50 = vmul.f32 %v411_v48, %v395_v35 }
 0x23a   : > { %v416_v51 = vmul.f32 %v527_v47, %v412_v50 }
 0x23c   : > { %v420_v52 = vadd.f32 %v528_v49, %v416_v51 }
 0x23e   : > { %421 = vst.msk [vmem:[%s273_s8] sm:$0xff] %vm309_vm0, %v420_v52 }
 0x23f PF: > { %s17_s24 = sadd.s32 1, %s539_s24  }
 0x240   : > { %p14_p4 = scmp.ge.s32.totalorder %s17_s24, 4  }
 0x242   :  { %16 = sbr.rel (!%p14_p4) target bundleno = 1 (0x1), region = 78 }

// kernel: cross_transformer_encoder_layer.3
= control target key start
LH: loop header
LB: loop body
LE: loop exit
PB: predicated region body
PF: predicated region fallthrough
CT: control target
= control target key end

     0   :  { %s370_s12 = smov 0   ;;  %s407_s0 = inlined_call_operand.vmem [shape: f32[32,32], index: 0, kind: input, shape index: {}]   ;;  %s408_s1 = inlined_call_operand.vmem [shape: bf16[64,32], index: 1, kind: input, shape index: {}]   ;;  %s409_s2 = inlined_call_operand.vmem [shape: f32[1,64], index: 2, kind: input, shape index: {}]   ;;  %s410_s3 = inlined_call_operand.vmem [shape: bf16[32,64], index: 3, kind: output, shape index: {}]  }
   0x1 LB: > { %s301_s13 = sadd.s32 4294967295, %s348_s12   ;;  %p305_p0 = scmp.ge.s32.totalorder %s348_s12, 1  ;;  %s348_s12 = sphi %s370_s12, %s13_s12  }
   0x2   : > { %p138_p1 = scmp.lt.s32.totalorder %s348_s12, 3 }
   0x4   : > { %p139_p2 = pnand %p305_p0, %p138_p1 }
   0x5   : > { %s306_s18 = sshll.u32 (!%p139_p2), %s301_s13, 1 }
   0x6   : > { %142 = sbr.rel (%p139_p2) target bundleno = 183 (0xb7), region = 32  ;;  %p163_p3 = scmp.lt.s32.totalorder (!%p139_p2), %s306_s18, 3 }
   0xb   : > { %v332_v0 = vld [vmem:[%s408_s1 + $0x18] sm:$0xff]  ;;  %vm210_vm0 = vcmask 261120   ;;  %v331_v2 = vld [vmem:[%s408_s1 + $0x10] sm:$0xff]  ;;  %v330_v4 = vld [vmem:[%s408_s1 + $0x8] sm:$0xff]  ;;  %s412_s18 = smov (!%p163_p3, %s306_s18), 3  ;;  %vm242_vm1 = vcmask 519168  }
   0xc   : > { %v224_v1 = vsel %vm210_vm0, %v332_v0, 0  ;;  %v221_v3 = vsel %vm210_vm0, %v331_v2, 0  ;;  %v218_v5 = vsel %vm210_vm0, %v330_v4, 0  ;;  %v329_v6 = vld [vmem:[%s408_s1] sm:$0xff]  ;;  %s307_s23 = sshll.u32 %s412_s18, 3  ;;  %s309_s29 = sshll.u32 %s412_s18, 2 }
   0xd   : > { %230 = vmatpush.bf16.xpose.msra.mxu0 %v224_v1  ;;  %v215_v7 = vsel %vm210_vm0, %v329_v6, 0  ;;  %s166_s26 = scalar_lea.vmem %s407_s0, %s307_s23  ;;  %v341_v11 = vld [vmem:[%s409_s2] ss:$0 sm:$0xff]  ;;  %s172_s5 = scalar_lea.vmem %s410_s3, %s309_s29 }
   0xe   : > { %v175_v8 = vld [vmem:[%s166_s26] sm:$0xff]  ;;  %v176_v9 = vld [vmem:[%s166_s26 + $0x8] sm:$0xff] }
   0xf   : > { %v177_v10 = vpack.c.bf16 %v176_v9, %v175_v8 }
  0x15   : > { %231 = vmatpush.bf16.xpose.msra.mxu0 %v221_v3 }
  0x1d   : > { %232 = vmatpush.bf16.xpose.msra.mxu0 %v218_v5 }
  0x25   : > { %233 = vmatpush.bf16.xpose.msra.mxu0 %v215_v7 }
  0x2c   : > { %326 = vmatmul.msk.bf16.vlgmr.msra.gmra.mxu0 %vm210_vm0, %v177_v10 }
  0xa9   : > { %v235_v12 = vpop.f32.mrf.mxu0 }
  0xaa   : > { %v236_v13 = vadd.f32 %v341_v11, %v235_v12 }
  0xac   : > { %v240_v14 = vpack.c.bf16 %v236_v13, %v236_v13 }
  0xae   : > { %243 = vst.msk [vmem:[%s172_s5] sm:$0xf] %vm242_vm1, %v240_v14 }
  0xb1   : > { %v237_v15 = vpop.f32.mrf.mxu0 }
  0xb2   : > { %v238_v16 = vadd.f32 %v341_v11, %v237_v15 }
  0xb4   : > { %v241_v17 = vpack.c.bf16 %v238_v16, %v238_v16 }
  0xb6   : > { %244 = vst.msk [vmem:[%s172_s5 + $0x4] sm:$0xf] %vm242_vm1, %v241_v17 }
  0xb7 PF: > { %s13_s12 = sadd.s32 1, %s348_s12  }
  0xb8   : > { %p10_p4 = scmp.ge.s32.totalorder %s13_s12, 4  }
  0xba   :  { %12 = sbr.rel (!%p10_p4) target bundleno = 1 (0x1), region = 62 }

// kernel: cross_transformer_encoder_layer.4
= control target key start
LH: loop header
LB: loop body
LE: loop exit
PB: predicated region body
PF: predicated region fallthrough
CT: control target
= control target key end

     0   :  { %s992_s27 = smov 0   ;;  %s994_s28 = smov 0   ;;  %s1103_s0 = inlined_call_operand.vmem [shape: f32[2,8,32], index: 0, kind: input, shape index: {}]   ;;  %s1104_s1 = inlined_call_operand.vmem [shape: bf16[2,16,64], index: 1, kind: input, shape index: {}]   ;;  %s1105_s2 = inlined_call_operand.vmem [shape: bf16[32,32], index: 2, kind: input, shape index: {}]   ;;  %s1106_s3 = inlined_call_operand.vmem [shape: f32[1,32], index: 3, kind: input, shape index: {}]   ;;  %s1107_s4 = inlined_call_operand.vmem [shape: bf16[32,32], index: 4, kind: input, shape index: {}]   ;;  %s1108_s5 = inlined_call_operand.vmem [shape: f32[1,32], index: 5, kind: input, shape index: {}]   ;;  %s1109_s6 = inlined_call_operand.vmem [shape: f32[1,32], index: 6, kind: input, shape index: {}]   ;;  %s1110_s7 = inlined_call_operand.vmem [shape: f32[1,32], index: 7, kind: input, shape index: {}]   ;;  %s1111_s8 = inlined_call_operand.vmem [shape: f32[2,8,32], index: 8, kind: output, shape index: {}]  }
   0x1   :  { %s996_s29 = smov 0  }
   0x2 LB: > { %s30_s30 = sadd.s32 1, %s930_s28  ;;  %p810_p0 = scmp.ge.s32.totalorder %s934_s29, 1  ;;  %s934_s29 = sphi %s996_s29, %s18_s29   ;;  %s930_s28 = sphi %s994_s28, %s1113_s28   ;;  %s926_s27 = sphi %s992_s27, %s1112_s27  }
   0x3   : > { %p32_p1 = scmp.ge.s32.totalorder %s30_s30, 2  ;;  %p290_p2 = scmp.lt.s32.totalorder %s934_s29, 3 }
   0x5   : > { %s1115_s30 = smov (%p32_p1, %s30_s30), 0  ;;  %p291_p3 = pnand %p810_p0, %p290_p2 }
   0x6   : > { %p333_p4 = scmp.lt.s32.totalorder (!%p291_p3), %s926_s27, 1  ;;  %s936_s20 = smov (!%p291_p3), 112  }
   0x7   : > { %294 = sbr.rel (%p291_p3) target bundleno = 1333 (0x535), region = 52  ;;  %s937_s21 = smov (!%p291_p3), 104  }
   0x8   : > { %s938_s22 = smov (!%p291_p3), 120   ;;  %s939_s25 = smov (!%p291_p3), 88  }
   0x9   : > { %s940_s26 = smov (!%p291_p3), 72   ;;  %s942_s9 = smov (!%p291_p3), 80  }
   0xa   : > { %s943_s10 = smov (!%p291_p3), 8   ;;  %s944_s11 = smov (!%p291_p3), 16  }
   0xb   : > { %s945_s12 = smov (!%p291_p3), 24  }
   0xc   : > { %v850_v0 = vld [vmem:[%s1105_s2 + $0x8] sm:$0xff]  ;;  %vm375_vm0 = vcmask 261120   ;;  %s1117_s27 = smov (!%p333_p4, %s926_s27), 1  ;;  %v849_v2 = vld [vmem:[%s1105_s2] sm:$0xff]  ;;  %vm405_vm1 = vcmask 64512   ;;  %vm425_vm2 = vcmask 130048  }
   0xd   : > { %v383_v1 = vsel %vm375_vm0, %v850_v0, 0  ;;  %s1017_s13 = sshll.u32 %s1117_s27, 3  ;;  %v380_v4 = vsel %vm375_vm0, %v849_v2, 0  ;;  %v888_v10 = vld [vmem:[%s1106_s3] ss:$0 sm:$0xff]  ;;  %s941_s27 = smov 96  }
   0xe   : > { %391 = vmatpush.bf16.xpose.msra.mxu0 %v383_v1  ;;  %s344_s16 = scalar_lea.vmem %s1104_s1, %s1017_s13  ;;  %s339_s19 = scalar_lea.vmem %s1103_s0, %s1017_s13  ;;  %vm636_vm3 = vcmask 195584  }
   0xf   : > { %v1023_v3 = vld [vmem:[%s344_s16] sm:$0xff] }
  0x10   : > { %516 = vrot.lane.b32.xlu1 %v1023_v3, %s936_s20  ;;  %v1031_v5 = vld [vmem:[%s339_s19] sm:$0xff]  ;;  %462 = vrot.lane.b32.xlu0 %v1023_v3, %s938_s22  ;;  %v410_v7 = vsel %vm405_vm1, %v1023_v3, 0 }
  0x11   : > { %v356_v6 = vpack.c.bf16 %v1031_v5, %v1031_v5  ;;  %419 = vmatpush.bf16.xpose.msra.mxu1 %v410_v7 }
  0x16   : > { %392 = vmatpush.bf16.xpose.msra.mxu0 %v380_v4 }
  0x18   : > { %570 = vrot.lane.b32.xlu1 %v1023_v3, %s937_s21 }
  0x1d   : > { %823 = vmatmul.msk.bf16.vlgmr.msra.gmra.mxu0 %vm375_vm0, %v356_v6 }
  0x82   : > { %v517_v8 = vpop.permute.xlu1 %516  ;;  %v463_v20 = vpop.permute.xlu0 %462 }
  0x83   : > { %v522_v9 = vsel %vm405_vm1, %v517_v8, 0  ;;  %v468_v21 = vsel %vm405_vm1, %v463_v20, 0 }
  0x84   : > { %531 = vmatpush.bf16.xpose.msrb.mxu1 %v522_v9  ;;  %477 = vmatpush.bf16.xpose.msra.mxu3 %v468_v21 }
  0x8a   : > { %v571_v18 = vpop.permute.xlu1 %570 }
  0x8b   : > { %v576_v19 = vsel %vm405_vm1, %v571_v18, 0 }
  0x8c   : > { %585 = vmatpush.bf16.xpose.msrb.mxu0 %v576_v19 }
  0x9a   : > { %v394_v11 = vpop.f32.mrf.mxu0 }
  0x9b   : > { %v395_v12 = vadd.f32 %v888_v10, %v394_v11 }
  0x9d   : > { %v398_v13 = vmul.f32 0.35355338, %v395_v12 }
  0x9f   : > { %v399_v14 = vpack.c.bf16 %v398_v13, %v398_v13 }
  0xa1   : > { %v458_v15 = vunpack.c.l.b16 %v399_v14  ;;  %828 = vmatmul.msk.bf16.vlgmr.msra.gmra.mxu1 %vm405_vm1, %v399_v14 }
  0xa2   : > { %v396_v16 = vpop.f32.mrf.mxu0 }
  0xa3   : > { %v459_v17 = vpack.c.b16 %v458_v15, %v458_v15 }
  0xa5   : > { %514 = vrot.lane.b32.xlu2 %v459_v17, %s936_s20  ;;  %460 = vrot.lane.b32.xlu0 %v459_v17, %s938_s22 }
  0xad   : > { %568 = vrot.lane.b32.xlu2 %v459_v17, %s937_s21 }
  0xff   : > { %v515_v22 = vpop.permute.xlu2 %514 }
 0x100   : > { %832 = vmatmul.msk.bf16.vlgmr.msrb.gmra.mxu1 %vm405_vm1, %v515_v22  ;;  %v852_v22 = vld [vmem:[%s1107_s4 + $0x8] sm:$0xff] }
 0x107   : > { %v569_v23 = vpop.permute.xlu2 %568 }
 0x108   : > { %834 = vmatmul.msk.bf16.vlgmr.msrb.gmra.mxu0 %vm405_vm1, %v569_v23  ;;  %v664_v23 = vsel %vm375_vm0, %v852_v22, 0 }
 0x109   : > { %672 = vmatpush.bf16.xpose.msra.mxu1 %v664_v23 }
 0x117   : > { %v461_v24 = vpop.permute.xlu0 %460 }
 0x118   : > { %830 = vmatmul.msk.bf16.vlgmr.msra.gmra.mxu3 %vm405_vm1, %v461_v24  ;;  %v851_v24 = vld [vmem:[%s1107_s4] sm:$0xff] }
 0x11e   : > { %v421_v25 = vpop.f32.mrf.mxu1 }
 0x11f   : > { %v426_v26 = vsel %vm425_vm2, %v421_v25, -inf }
 0x120   : > { %427 = vmax.xlane.f32.xlu0 %v426_v26 }
 0x126   : > { %v423_v27 = vpop.f32.mrf.mxu1 }
 0x134   : > { %495 = vrot.lane.b32.xlu0 %v1023_v3, %s939_s25 }
 0x17d   : > { %v533_v28 = vpop.f32.mrf.mxu1 }
 0x17e   : > { %v537_v29 = vsel %vm425_vm2, %v533_v28, -inf }
 0x17f   : > { %538 = vmax.xlane.f32.xlu2 %v537_v29 }
 0x185   : > { %v535_v30 = vpop.f32.mrf.mxu1  ;;  %v587_v31 = vpop.f32.mrf.mxu0 }
 0x186   : > { %v591_v32 = vsel %vm425_vm2, %v587_v31, -inf }
 0x187   : > { %592 = vmax.xlane.f32.xlu2 %v591_v32 }
 0x18d   : > { %v589_v33 = vpop.f32.mrf.mxu0 }
 0x18e   : > { %v889_v33 = vld [vmem:[%s1108_s5] ss:$0 sm:$0xff] }
 0x193   : > { %v428_v34 = vpop.xlane.xlu0 %427 }
 0x194   : > { %v429_v35 = vsub.f32 %v421_v25, %v428_v34  ;;  %v661_v25 = vsel %vm375_vm0, %v851_v24, 0 }
 0x195   : > { %673 = vmatpush.bf16.xpose.msra.mxu1 %v661_v25 }
 0x196   : > { %v430_v36 = vmul.f32 1.442695, %v429_v35 }
 0x198   : > { %892 = vpow2.f32 %v430_v36 }
 0x19b   : > { %v479_v37 = vpop.f32.mrf.mxu3 }
 0x19c   : > { %v483_v38 = vsel %vm425_vm2, %v479_v37, -inf }
 0x19d   : > { %484 = vmax.xlane.f32.xlu1 %v483_v38 }
 0x19e   : > { %v893_v39 = vpop.eup %892 }
 0x19f   : > { %v432_v40 = vsel %vm425_vm2, %v893_v39, 0.0 }
 0x1a0   : > { %433 = vadd.xlane.f32.xlu0 %v432_v40 }
 0x1a3   : > { %v481_v41 = vpop.f32.mrf.mxu3 }
 0x1a6   : > { %v496_v43 = vpop.permute.xlu0 %495 }
 0x1b4   : > { %603 = vrot.lane.b32.xlu0 %v1023_v3, %s940_s26  ;;  %s351_s26 = scalar_lea.vmem %s1111_s8, %s1017_s13 }
 0x1b6   : > { %438 = vrot.lane.b32.xlu1 %v1023_v3, %s941_s27 }
 0x1be   : > { %549 = vrot.lane.b32.xlu1 %v1023_v3, %s942_s9 }
 0x1f2   : > { %v539_v42 = vpop.xlane.xlu2 %538 }
 0x1f3   : > { %v540_v46 = vsub.f32 %v533_v28, %v539_v42 }
 0x1f5   : > { %v541_v48 = vmul.f32 1.442695, %v540_v46 }
 0x1fa   : > { %v593_v49 = vpop.xlane.xlu2 %592 }
 0x1fb   : > { %v594_v52 = vsub.f32 %v587_v31, %v593_v49 }
 0x1fd   : > { %v595_v54 = vmul.f32 1.442695, %v594_v52 }
 0x210   : > { %v485_v44 = vpop.xlane.xlu1 %484 }
 0x211   : > { %v486_v45 = vsub.f32 %v479_v37, %v485_v44 }
 0x213   : > { %v487_v47 = vmul.f32 1.442695, %v486_v45  ;;  %v434_v50 = vpop.xlane.xlu0 %433 }
 0x215   : > { %894 = vpow2.f32 %v487_v47 }
 0x216   : > { %896 = vpow2.f32 %v541_v48 }
 0x217   : > { %898 = vrcp.f32 %v434_v50 }
 0x218   : > { %900 = vpow2.f32 %v595_v54 }
 0x21b   : > { %v895_v51 = vpop.eup %894 }
 0x21c   : > { %v489_v53 = vsel %vm425_vm2, %v895_v51, 0.0  ;;  %v897_v55 = vpop.eup %896 }
 0x21d   : > { %490 = vadd.xlane.f32.xlu2 %v489_v53  ;;  %v899_v56 = vpop.eup %898  ;;  %v543_v57 = vsel %vm425_vm2, %v897_v55, 0.0 }
 0x21e   : > { %v436_v58 = vmul.f32 %v899_v56, %v893_v39  ;;  %v901_v60 = vpop.eup %900  ;;  %v946_v39 = vmov 32.0  }
 0x21f   : > { %v597_v62 = vsel %vm425_vm2, %v901_v60, 0.0 }
 0x220   : > { %v437_v61 = vpack.c.bf16 %v436_v58, %v436_v58 }
 0x225   : > { %544 = vadd.xlane.f32.xlu2 %v543_v57 }
 0x226   : > { %v604_v0 = vpop.permute.xlu0 %603 }
 0x228   : > { %v439_v59 = vpop.permute.xlu1 %438 }
 0x229   : > { %451 = vmatpush.bf16.msra.mxu2 %v439_v59  ;;  %v890_v59 = vld [vmem:[%s1109_s6] ss:$0 sm:$0xff] }
 0x22c   : > { %829 = vmatmul.msk.bf16.vlgmr.msra.gmra.mxu2 %vm425_vm2, %v437_v61  ;;  %v891_v61 = vld [vmem:[%s1110_s7] ss:$0 sm:$0xff] }
 0x22d   : > { %508 = vmatpush.bf16.msrb.mxu2 %v496_v43  ;;  %598 = vadd.xlane.f32.xlu2 %v597_v62 }
 0x230   : > { %v550_v63 = vpop.permute.xlu1 %549 }
 0x231   : > { %562 = vmatpush.bf16.msrb.mxu3 %v550_v63  ;;  %616 = vmatpush.bf16.msra.mxu2 %v604_v0 }
 0x290   : > { %v491_v1 = vpop.xlane.xlu2 %490 }
 0x291   : > { %902 = vrcp.f32 %v491_v1 }
 0x297   : > { %v903_v2 = vpop.eup %902 }
 0x298   : > { %v493_v3 = vmul.f32 %v903_v2, %v895_v51  ;;  %v545_v4 = vpop.xlane.xlu2 %544 }
 0x299   : > { %904 = vrcp.f32 %v545_v4 }
 0x29a   : > { %v494_v6 = vpack.c.bf16 %v493_v3, %v493_v3 }
 0x29c   : > { %831 = vmatmul.msk.bf16.vlgmr.msrb.gmra.mxu2 %vm425_vm2, %v494_v6 }
 0x29f   : > { %v905_v7 = vpop.eup %904 }
 0x2a0   : > { %v547_v8 = vmul.f32 %v905_v7, %v897_v55  ;;  %v599_v9 = vpop.xlane.xlu2 %598 }
 0x2a1   : > { %906 = vrcp.f32 %v599_v9 }
 0x2a2   : > { %v548_v10 = vpack.c.bf16 %v547_v8, %v547_v8  ;;  %908 = vrcp.f32 %v946_v39 }
 0x2a4   : > { %833 = vmatmul.msk.bf16.vlgmr.msrb.gmra.mxu3 %vm425_vm2, %v548_v10 }
 0x2a7   : > { %v907_v11 = vpop.eup %906 }
 0x2a8   : > { %v601_v12 = vmul.f32 %v907_v11, %v901_v60  ;;  %v909_v40 = vpop.eup %908 }
 0x2a9   : > { %v686_v41 = vmul.f32 32.0, %v909_v40  ;;  %vm690_vm4 = vweird.f32 %v909_v40 }
 0x2aa   : > { %v602_v13 = vpack.c.bf16 %v601_v12, %v601_v12 }
 0x2ab   : > { %v687_v42 = vsub.f32 1.0, %v686_v41 }
 0x2ac   : > { %835 = vmatmul.msk.bf16.vlgmr.msra.gmra.mxu2 %vm425_vm2, %v602_v13 }
 0x2ad   : > { %v688_v43 = vmul.f32 %v909_v40, %v687_v42 }
 0x2af   : > { %v453_v14 = vpop.f32.mrf.mxu2  ;;  %v689_v44 = vadd.f32 %v909_v40, %v688_v43 }
 0x2b1   : > { %v691_v45 = vsel %vm690_vm4, %v909_v40, %v689_v44 }
 0x2b7   : > { %v455_v15 = vpop.f32.mrf.mxu2 }
 0x31f   : > { %v510_v16 = vpop.f32.mrf.mxu2 }
 0x320   : > { %623 = vrot.lane.b32.xlu2 %v510_v16, %s943_s10 }
 0x327   : > { %v512_v17 = vpop.f32.mrf.mxu2  ;;  %v564_v18 = vpop.f32.mrf.mxu3 }
 0x328   : > { %627 = vrot.lane.b32.xlu1 %v564_v18, %s944_s11 }
 0x32f   : > { %v566_v19 = vpop.f32.mrf.mxu3  ;;  %v618_v20 = vpop.f32.mrf.mxu2 }
 0x330   : > { %631 = vrot.lane.b32.xlu0 %v618_v20, %s945_s12 }
 0x337   : > { %v620_v21 = vpop.f32.mrf.mxu2 }
 0x37a   : > { %v624_v26 = vpop.permute.xlu2 %623 }
 0x37b   : > { %v634_v28 = vsel %vm405_vm1, %v453_v14, %v624_v26 }
 0x39a   : > { %v628_v27 = vpop.permute.xlu1 %627 }
 0x39b   : > { %v635_v29 = vsel %vm425_vm2, %v634_v28, %v628_v27 }
 0x3a2   : > { %v632_v30 = vpop.permute.xlu0 %631 }
 0x3a3   : > { %v637_v31 = vsel %vm636_vm3, %v635_v29, %v632_v30 }
 0x3a4   : > { %v638_v32 = vpack.c.bf16 %v637_v31, %v637_v31 }
 0x3a6   : > { %844 = vmatmul.msk.bf16.vlgmr.msra.gmra.mxu1 %vm375_vm0, %v638_v32 }
 0x423   : > { %v675_v34 = vpop.f32.mrf.mxu1 }
 0x424   : > { %v676_v35 = vadd.f32 %v889_v33, %v675_v34 }
 0x426   : > { %v679_v36 = vadd.f32 %v676_v35, %v1031_v5 }
 0x428   : > { %v682_v37 = vsel %vm375_vm0, %v679_v36, 0.0 }
 0x429   : > { %683 = vadd.xlane.f32.xlu1 %v682_v37 }
 0x42b   : > { %v677_v38 = vpop.f32.mrf.mxu1 }
 0x49c   : > { %v684_v46 = vpop.xlane.xlu1 %683 }
 0x49d   : > { %v692_v47 = vmul.f32 %v691_v45, %v684_v46 }
 0x49f   : > { %v693_v48 = vsub.f32 %v679_v36, %v692_v47 }
 0x4a1   : > { %v694_v49 = vmul.f32 %v693_v48, %v693_v48 }
 0x4a3   : > { %v695_v50 = vsel %vm375_vm0, %v694_v49, 0.0 }
 0x4a4   : > { %696 = vadd.xlane.f32.xlu0 %v695_v50 }
 0x517   : > { %v697_v5 = vpop.xlane.xlu0 %696 }
 0x518   : > { %v698_v51 = vmul.f32 %v697_v5, %v691_v45 }
 0x51a   : > { %v699_v52 = vadd.f32 1e-05, %v698_v51 }
 0x51c   : > { %910 = vrsqrt.f32 %v699_v52  ;;  %vm706_vm6 = vweird.f32 %v699_v52 }
 0x522   : > { %v911_v53 = vpop.eup %910 }
 0x523   : > { %v701_v54 = vmul.f32 %v911_v53, %v699_v52  ;;  %vm707_vm5 = vweird.f32 %v911_v53 }
 0x524   : > { %vm708_vm7 = vmor %vm706_vm6, %vm707_vm5 }
 0x525   : > { %v702_v55 = vmul.f32 %v911_v53, %v701_v54 }
 0x527   : > { %v703_v56 = vmul.f32 0.5, %v702_v55 }
 0x529   : > { %v704_v57 = vsub.f32 1.5, %v703_v56 }
 0x52b   : > { %v705_v58 = vmul.f32 %v911_v53, %v704_v57 }
 0x52d   : > { %v709_v60 = vsel %vm708_vm7, %v911_v53, %v705_v58 }
 0x52e   : > { %v710_v62 = vmul.f32 %v709_v60, %v693_v48 }
 0x530   : > { %v714_v63 = vmul.f32 %v890_v59, %v710_v62 }
 0x532   : > { %v718_v0 = vadd.f32 %v891_v61, %v714_v63 }
 0x534   : > { %719 = vst.msk [vmem:[%s351_s26] sm:$0xff] %vm375_vm0, %v718_v0 }
 0x535 PF: > { %s18_s29 = sadd.s32 1, %s934_s29   ;;  %s1112_s27 = smov %s930_s28 }
 0x536   : > { %p15_p5 = scmp.ge.s32.totalorder %s18_s29, 4   ;;  %s1113_s28 = smov %s1115_s30 }
 0x538   :  { %17 = sbr.rel (!%p15_p5) target bundleno = 2 (0x2), region = 85 }

</bundles_post_ra>
